<compile_context>
chip_gen: v7x
topology: tpu7x:2x2x1
jax: 0.10.0
libtpu: 0.0.40
codegen_flags: <defaults>
</compile_context>

<pallas_src>
import functools

import jax
import jax.numpy as jnp
from jax.experimental import pallas as pl
from jax.experimental.pallas import tpu as pltpu


def _lambda_kernel(x_ref, o_ref, *, fn):
    """Apply the (traced) elementwise lambda to the current VMEM tile."""
    o_ref[...] = fn(x_ref[...]).astype(o_ref.dtype)


def _round_up(v, m):
    return -(-v // m) * m


def _vmem_capacity_bytes():
    """Per-TensorCore VMEM capacity; conservative (v7x-sized) fallback."""
    try:
        return int(pltpu.get_tpu_info().vmem_capacity_bytes)
    except Exception:
        return 64 * 1024 * 1024


def _pallas_elementwise_2d(x2d, fn, out_dtype, *, tile_rows, lanes,
                           vmem_limit, donate):
    rows = x2d.shape[0]
    grid = (pl.cdiv(rows, tile_rows),)  # ragged last row-block handled by Pallas
    return pl.pallas_call(
        functools.partial(_lambda_kernel, fn=fn),
        out_shape=jax.ShapeDtypeStruct((rows, lanes), out_dtype),
        grid_spec=pltpu.PrefetchScalarGridSpec(
            num_scalar_prefetch=0,
            grid=grid,
            in_specs=[pl.BlockSpec((tile_rows, lanes), lambda i: (i, 0))],
            out_specs=pl.BlockSpec((tile_rows, lanes), lambda i: (i, 0)),
        ),
        compiler_params=pltpu.CompilerParams(
            dimension_semantics=("parallel",),
            vmem_limit_bytes=vmem_limit,
        ),
        input_output_aliases=({0: 0} if donate else {}),
    )(x2d)


def lambda_layer(x, lambda_function, *, target_block_bytes=None,
                 min_pallas_bytes=2 * 1024 * 1024, donate_input=False):
    """Pallas implementation of LambdaLayer.forward for elementwise lambdas.

    x: any shape/dtype array.
    lambda_function: jnp-compatible, elementwise callable.
    target_block_bytes: per-block VMEM budget; None -> derived from the chip
      (and always clamped so 4x block + margin fits the detected VMEM).
    min_pallas_bytes: below this input size the lambda is applied directly in
      JAX (launch overhead + unfused HBM round trip would dominate).
    donate_input: alias the input HBM buffer to the output (only when the
      caller no longer needs x; ignored if dtype changes or a tail split is
      needed, where no HBM would actually be saved).
    """
    orig_shape = x.shape
    n = x.size
    in_itemsize = jnp.dtype(x.dtype).itemsize

    # Small / empty inputs: direct application is strictly faster and XLA can
    # fuse it with neighboring elementwise ops.
    if n == 0 or n < 128 or n * in_itemsize < min_pallas_bytes:
        return lambda_function(x)

    # Trace the lambda's output spec: keeps dtype-changing lambdas correct and
    # guards (at shape level) against non-shape-preserving lambdas.
    # TODO(synk): shape-preserving but position-dependent lambdas (softmax,
    # normalization, per-channel broadcasts) have no generic translation under
    # this flatten-to-(rows, lanes) tiling and are not detected here.
    try:
        out_aval = jax.eval_shape(lambda_function,
                                  jax.ShapeDtypeStruct(x.shape, x.dtype))
        shape_ok = getattr(out_aval, "shape", None) == tuple(orig_shape)
    except Exception:
        shape_ok = False
    if not shape_ok:
        return lambda_function(x)
    out_dtype = out_aval.dtype
    out_itemsize = jnp.dtype(out_dtype).itemsize
    itemsize = max(in_itemsize, out_itemsize)

    # Sublane packing of the narrowest dtype: f32 -> 8, bf16 -> 16, int8 -> 32.
    min_sublane = 8 * max(1, 4 // min(in_itemsize, out_itemsize))

    # Generation-aware block budget: ~vmem/8 per block so 4x block (in+out,
    # double-buffered) + margin stays well inside the chip's VMEM.
    vmem_cap = _vmem_capacity_bytes()
    block_cap = max(1 << 20, vmem_cap // 8)      # 8 MiB on v7x, 16 MiB on v5e/v6e
    if target_block_bytes is None:
        target_block_bytes = block_cap
    target_block_bytes = min(max(int(target_block_bytes), 1 << 20), block_cap)

    # Widest lane count (multiple of 128) that divides n exactly -> pure
    # reshape (no copy) and a lane-dense output slab.  Otherwise lanes=128 and
    # the <=127-element tail is handled with plain jnp (no whole-tensor pad).
    lanes = 128
    for cand in (4096, 2048, 1024, 512, 256, 128):
        if n % cand == 0:
            lanes = cand
            break

    n_bulk = (n // lanes) * lanes
    rows = n_bulk // lanes
    flat = x.reshape(-1)

    # Block rows: budget-limited, but shrunk so the grid has >=4 blocks when
    # the row extent allows it (keeps both v7x TensorCores busy).
    if rows <= min_sublane:
        tile_rows = rows  # single full-extent block (always legal)
    else:
        tr_budget = max(
            min_sublane,
            (target_block_bytes // (lanes * itemsize) // min_sublane) * min_sublane)
        tr_balance = max(min_sublane, _round_up(pl.cdiv(rows, 4), min_sublane))
        tile_rows = min(tr_budget, tr_balance)

    # Real VMEM footprint is ~4x the block (in+out, double-buffered) + margin.
    block_bytes = tile_rows * lanes * itemsize
    vmem_limit = 4 * block_bytes + (8 << 20)
    vmem_limit = min(vmem_limit, (vmem_cap * 3) // 4)
    vmem_limit = max(vmem_limit, 16 << 20)

    donate = donate_input and (out_dtype == x.dtype) and (n_bulk == n)

    bulk2d = (flat if n_bulk == n else flat[:n_bulk]).reshape(rows, lanes)
    out2d = _pallas_elementwise_2d(bulk2d, lambda_function, out_dtype,
                                   tile_rows=tile_rows, lanes=lanes,
                                   vmem_limit=int(vmem_limit), donate=donate)
    out_flat = out2d.reshape(-1)

    if n_bulk != n:
        tail_out = lambda_function(flat[n_bulk:]).astype(out_dtype)
        out_flat = jnp.concatenate([out_flat, tail_out])

    return out_flat.reshape(orig_shape)


if __name__ == "__main__":
    key = jax.random.PRNGKey(0)

    # Concrete elementwise lambda for this synthetic LambdaLayer instance.
    lambda_function = lambda t: jnp.maximum(t, 0.0) * 2.0 + 1.0

    # Small NCHW input, consistent with a conv-style feature map.
    x = jax.random.normal(key, (2, 4, 16, 16), dtype=jnp.float32)
    ref = lambda_function(x)

    # Default path: tiny tensors take the direct-JAX fast path.
    out_default = jax.block_until_ready(lambda_layer(x, lambda_function))
    assert out_default.shape == x.shape and out_default.dtype == ref.dtype
    assert jnp.allclose(out_default, ref, atol=1e-6), "fallback mismatch"

    # Forced Pallas path (min_pallas_bytes=0) to validate the kernel itself.
    out_kernel = jax.block_until_ready(
        lambda_layer(x, lambda_function, min_pallas_bytes=0))
    assert out_kernel.shape == x.shape and out_kernel.dtype == ref.dtype
    assert jnp.allclose(out_kernel, ref, atol=1e-6), "kernel mismatch"

    # Ragged size (n % 128 != 0): exercises the bulk-kernel + jnp-tail split.
    x_ragged = jax.random.normal(jax.random.PRNGKey(1), (2, 4, 17, 17),
                                 dtype=jnp.float32)
    out_ragged = jax.block_until_ready(
        lambda_layer(x_ragged, lambda_function, min_pallas_bytes=0))
    assert jnp.allclose(out_ragged, lambda_function(x_ragged), atol=1e-6), \
        "ragged-path mismatch"

    print("KERNEL_OK")
</pallas_src>

<mosaic_0001>
module attributes {stable_mosaic.version = 11 : i64} {
  func.func @_lambda_kernel(%arg0: i32, %arg1: memref<1x2048xf32, #tpu.memory_space<vmem>>, %arg2: memref<1x2048xf32, #tpu.memory_space<vmem>>) attributes {dimension_semantics = [#tpu.dimension_semantics<parallel>], iteration_bounds = array<i64: 1>, scalar_prefetch = 0 : i64, scratch_operands = 0 : i64, tpu.core_type = #tpu.core_type<tc>, window_params = [{transform_indices = @transform_0, window_bounds = array<i64: 1, 2048>}, {transform_indices = @transform_1, window_bounds = array<i64: 1, 2048>}]} {
    %c0 = arith.constant 0 : index
    %c0_0 = arith.constant 0 : index
    %0 = vector.load %arg1[%c0, %c0_0] : memref<1x2048xf32, #tpu.memory_space<vmem>>, vector<1x2048xf32>
    %cst = arith.constant 0.000000e+00 : f32
    %1 = vector.broadcast %cst : f32 to vector<1x2048xf32>
    %2 = arith.maximumf %0, %1 : vector<1x2048xf32>
    %cst_1 = arith.constant 2.000000e+00 : f32
    %3 = vector.broadcast %cst_1 : f32 to vector<1x2048xf32>
    %4 = arith.mulf %2, %3 : vector<1x2048xf32>
    %cst_2 = arith.constant 1.000000e+00 : f32
    %5 = vector.broadcast %cst_2 : f32 to vector<1x2048xf32>
    %6 = arith.addf %4, %5 : vector<1x2048xf32>
    %c0_3 = arith.constant 0 : index
    %c0_4 = arith.constant 0 : index
    %7 = vector.load %arg2[%c0_3, %c0_4] : memref<1x2048xf32, #tpu.memory_space<vmem>>, vector<1x2048xf32>
    tpu.vector_store %arg2[%c0_3, %c0_4], %6 {strides = array<i32>} : memref<1x2048xf32, #tpu.memory_space<vmem>>, vector<1x2048xf32>,
    return
  }
  func.func @transform_0(%arg0: i32) -> (i32, i32) {
    %c0_i32 = arith.constant 0 : i32
    %c0_i32_0 = arith.constant 0 : i32
    return %arg0, %c0_i32 : i32, i32
  }
  func.func @transform_1(%arg0: i32) -> (i32, i32) {
    %c0_i32 = arith.constant 0 : i32
    %c0_i32_0 = arith.constant 0 : i32
    return %arg0, %c0_i32 : i32, i32
  }
}

</mosaic_0001>

<bundles_post_ra>
// kernel: tpu_custom_call.1
= control target key start
LH: loop header
LB: loop body
LE: loop exit
PB: predicated region body
PF: predicated region fallthrough
CT: control target
= control target key end

     0   :  { %6 = vsyncpa [#allocation3], 0  ;;  %s132_s0 = inlined_call_operand.hbm [shape: f32[1,2048], index: 0, kind: input, shape index: {}]   ;;  %s133_s1 = inlined_call_operand.hbm [shape: f32[1,2048], index: 1, kind: output, shape index: {}]  }
   0x1   :  { %7 = vsyncpa [#allocation4], 0  ;;  %s96_s6 = smov [#allocation2]   ;;  %s48_s10 = scalar_lea.hbm %s132_s0, 256 }
   0x2   :  { %s14_s7 = sshll.u32 %s96_s6, 4  ;;  %p49_p0 = scmp.ne.s32.totalorder %s132_s0, %s48_s10  ;;  %s15_s7 = int_to_ptr.vmem [resolvable:$true] %s14_s7 }
   0x3   :  { %p52_p1 = scmp.lt.u32.totalorder %s48_s10, %s132_s0 }
   0x5   :  { %p54_p2 = pnand %p52_p1, %p49_p0 }
   0x7   :  { %57 = shalt.err (!%p54_p2)
}
   0x8   :  { %s58_s15 = scalar_lea.vmem %s15_s7, 256  ;;  %p63_p4 = scmp.lt.s32.totalorder %s15_s7, %s15_s7 }
   0x9   :  { %p59_p3 = scmp.ne.s32.totalorder %s15_s7, %s58_s15  ;;  %p64_p5 = scmp.lt.s32.totalorder %s58_s15, %s58_s15 }
   0xb   :  { %p65_p6 = por %p64_p5, %p63_p4 }
   0xd   :  { %p66_p7 = pnand %p65_p6, %p59_p3 }
   0xf   :  { %69 = shalt.err (!%p66_p7)
}
  0x10   :  { %17 = dma.hbm_to_vmem [thread:$0]  %s132_s0, 256, %s15_s7, [#allocation3]  }
  0x11   :  { %92 = dma.done.wait [#allocation3], 256  }
  0x12   :  { %93 = vsyncadd [#allocation3], 4294967040  ;;  %v21_v0 = vld [vmem:[#allocation2] sm:$0xff]  ;;  %v22_v1 = vld [vmem:[#allocation2 + $0x8] sm:$0xff]  ;;  %s97_s18 = smov [#allocation5]  }
  0x13   :  { %v23_v2 = vmax.f32 %v21_v0, 0.0  ;;  %v24_v3 = vmax.f32 %v22_v1, 0.0  ;;  %s37_s19 = sshll.u32 %s97_s18, 4  ;;  %s38_s19 = int_to_ptr.vmem [resolvable:$true] %s37_s19 }
  0x14   :  { %s70_s20 = scalar_lea.vmem %s38_s19, 256  ;;  %p75_p9 = scmp.lt.s32.totalorder %s38_s19, %s38_s19 }
  0x15   :  { %v25_v4 = vmul.f32 2.0, %v23_v2  ;;  %v26_v5 = vmul.f32 2.0, %v24_v3  ;;  %p71_p8 = scmp.ne.s32.totalorder %s38_s19, %s70_s20  ;;  %p76_p10 = scmp.lt.s32.totalorder %s70_s20, %s70_s20 }
  0x17   :  { %v27_v6 = vadd.f32 1.0, %v25_v4  ;;  %v28_v7 = vadd.f32 1.0, %v26_v5  ;;  %p77_p11 = por %p76_p10, %p75_p9 }
  0x19   :  { %29 = vst [vmem:[#allocation5] sm:$0xff] %v27_v6  ;;  %30 = vst [vmem:[#allocation5 + $0x8] sm:$0xff] %v28_v7  ;;  %p78_p12 = pnand %p77_p11, %p71_p8 }
  0x1b   :  { %81 = shalt.err (!%p78_p12)
}
  0x1c   :  { %s82_s22 = scalar_lea.hbm %s133_s1, 256 }
  0x1d   :  { %p83_p13 = scmp.ne.s32.totalorder %s133_s1, %s82_s22  ;;  %p86_p0 = scmp.lt.u32.totalorder %s82_s22, %s133_s1 }
  0x1f   :  { %p88_p1 = pnand %p86_p0, %p83_p13 }
  0x21   :  { %91 = shalt.err (!%p88_p1)
}
  0x22   :  { %40 = dma.vmem_to_hbm [thread:$0]  %s38_s19, 256, %s133_s1, [#allocation4]  }
  0x23   :  { %94 = dma.done.wait [#allocation4], 256  }
  0x24   :  { %95 = vsyncadd [#allocation4], 4294967040 }
  0x25   :  { %44 = vsyncpa [#allocation3], 1 }
  0x26   :  { %45 = vsyncpa [#allocation4], 1 }

</bundles_post_ra>
